<compile_context>
chip_gen: v7x
topology: tpu7x:2x2x1
jax: 0.10.0
libtpu: 0.0.40
codegen_flags: <defaults>
</compile_context>

<pallas_src>
import jax
import jax.numpy as jnp
from jax.experimental import pallas as pl
from jax.experimental.pallas import tpu as pltpu

IN_FEATURES = 784
HIDDEN = 64
OUT_FEATURES = 10
OUT_PAD = 128       # lane-dense padded fc2 output width
MAX_TILE_B = 1024   # keeps double-buffered f32 input tiles within all generations' scoped VMEM


def _round_up(n, m):
    return ((n + m - 1) // m) * m


def _mlp_kernel(x_ref, w1_ref, b1_ref, w2_ref, b2_ref, o_ref):
    # x arrives as f32 from HBM; cast to bf16 on-chip right before the MXU (saves the
    # separate wrapper-side bf16 materialization pass over HBM).
    x = x_ref[...].astype(jnp.bfloat16)
    # fc1: (TB, 784) bf16 @ (784, 64) bf16 -> f32 accumulate, + f32 bias
    h = jnp.dot(x, w1_ref[...], preferred_element_type=jnp.float32) + b1_ref[...]
    # QuadraticActivation: x * x  (VPU, f32)
    h = h * h
    # fc2: (TB, 64) bf16 @ (64, 128 zero-padded) bf16 -> f32 accumulate, + f32 bias
    out = jnp.dot(h.astype(jnp.bfloat16), w2_ref[...],
                  preferred_element_type=jnp.float32) + b2_ref[...]
    o_ref[...] = out.astype(o_ref.dtype)   # bf16 writeback -> halves padded output bytes


def prepare_params(w1, b1, w2, b2):
    """One-time parameter prep (transpose / pad / cast hoisted out of the call path).

    w1: (64, 784) torch fc1.weight   b1: (64,)
    w2: (10, 64)  torch fc2.weight   b2: (10,)
    """
    w1_t = jnp.asarray(w1, jnp.bfloat16).T                                     # (784, 64)
    b1_2d = jnp.asarray(b1, jnp.float32)[None, :]                              # (1, 64)
    # Zero-pad fc2 to 128 output lanes so the kernel's output block stays lane-dense.
    w2_t = jnp.zeros((HIDDEN, OUT_PAD), jnp.bfloat16)
    w2_t = w2_t.at[:, :OUT_FEATURES].set(jnp.asarray(w2, jnp.bfloat16).T)      # (64, 128)
    b2_2d = jnp.zeros((1, OUT_PAD), jnp.float32)
    b2_2d = b2_2d.at[:, :OUT_FEATURES].set(jnp.asarray(b2, jnp.float32))       # (1, 128)
    return w1_t, b1_2d, w2_t, b2_2d


def _batch_semantics(num_tiles):
    """CORE_PARALLEL on v7x (2 TensorCores per chip) when both cores get work; else 'parallel'."""
    try:
        kind = jax.devices()[0].device_kind.lower()
    except Exception:
        kind = ""
    if ("7x" in kind or "v7" in kind) and num_tiles >= 2 and num_tiles % 2 == 0:
        return (pltpu.CORE_PARALLEL,)
    return ("parallel",)


@jax.jit
def neural_network_forward(x, w1_t, b1_2d, w2_t, b2_2d):
    """Forward pass matching the PyTorch NeuralNetwork module.

    x: any shape whose trailing elements flatten to rows of 784 (e.g. (B, 1, 28, 28)).
    Params must come from prepare_params(). Returns (B, 10) float32 logits.
    """
    x2d = x.reshape(-1, IN_FEATURES).astype(jnp.float32)
    B = x2d.shape[0]

    # Balanced batch tiling: bounds zero-padding to <8 rows per tile.
    num_tiles = pl.cdiv(B, MAX_TILE_B)
    TB = _round_up(pl.cdiv(B, num_tiles), 8)
    B_pad = TB * num_tiles

    if B_pad != B:
        x2d = jnp.pad(x2d, ((0, B_pad - B), (0, 0)))   # zero rows -> no garbage in padded tiles

    out_padded = pl.pallas_call(
        _mlp_kernel,
        out_shape=jax.ShapeDtypeStruct((B_pad, OUT_PAD), jnp.bfloat16),
        grid=(num_tiles,),
        in_specs=[
            pl.BlockSpec((TB, IN_FEATURES), lambda i: (i, 0)),       # streamed f32 activations
            pl.BlockSpec((IN_FEATURES, HIDDEN), lambda i: (0, 0)),   # resident fc1 weight (bf16)
            pl.BlockSpec((1, HIDDEN), lambda i: (0, 0)),             # resident fc1 bias (f32)
            pl.BlockSpec((HIDDEN, OUT_PAD), lambda i: (0, 0)),       # resident fc2 weight (bf16)
            pl.BlockSpec((1, OUT_PAD), lambda i: (0, 0)),            # resident fc2 bias (f32)
        ],
        out_specs=pl.BlockSpec((TB, OUT_PAD), lambda i: (i, 0)),
        compiler_params=pltpu.CompilerParams(
            dimension_semantics=_batch_semantics(num_tiles),
            vmem_limit_bytes=32 * 1024 * 1024,
        ),
    )(x2d, w1_t, b1_2d, w2_t, b2_2d)

    # Single small op: slice off padding + cast logits back to f32 (one ~40 B/row pass).
    return out_padded[:B, :OUT_FEATURES].astype(jnp.float32)


def init_params(key):
    """Deterministic parameter init mimicking nn.Linear's uniform(-1/sqrt(fan_in), +)."""
    k1, k2, k3, k4 = jax.random.split(key, 4)
    bound1 = 1.0 / jnp.sqrt(784.0)
    bound2 = 1.0 / jnp.sqrt(64.0)
    w1 = jax.random.uniform(k1, (64, 784), jnp.float32, -bound1, bound1)
    b1 = jax.random.uniform(k2, (64,), jnp.float32, -bound1, bound1)
    w2 = jax.random.uniform(k3, (10, 64), jnp.float32, -bound2, bound2)
    b2 = jax.random.uniform(k4, (10,), jnp.float32, -bound2, bound2)
    return w1, b1, w2, b2


if __name__ == "__main__":
    key = jax.random.PRNGKey(0)
    k_x, k_p = jax.random.split(key)

    # MNIST-like input: (batch, 1, 28, 28) == 784 features per image.
    x = jax.random.normal(k_x, (8, 1, 28, 28), jnp.float32)
    w1, b1, w2, b2 = init_params(k_p)

    params = prepare_params(w1, b1, w2, b2)
    out = neural_network_forward(x, *params)
    out = jax.block_until_ready(out)

    x2d = x.reshape(-1, 784)

    # Reference with the same bf16 casts as the kernel (tight check on kernel semantics).
    h_bf = jnp.dot(x2d.astype(jnp.bfloat16), jnp.asarray(w1, jnp.bfloat16).T,
                   preferred_element_type=jnp.float32) + b1
    h_bf = h_bf * h_bf
    ref_bf = jnp.dot(h_bf.astype(jnp.bfloat16), jnp.asarray(w2, jnp.bfloat16).T,
                     preferred_element_type=jnp.float32) + b2
    ref_bf = ref_bf.astype(jnp.bfloat16).astype(jnp.float32)   # kernel writes bf16 output

    # Pure f32 reference matching the PyTorch module (loose check for bf16 drift).
    h32 = x2d @ w1.T + b1
    ref_f32 = (h32 * h32) @ w2.T + b2

    assert out.shape == (8, 10), out.shape
    assert out.dtype == jnp.float32, out.dtype
    assert jnp.allclose(out, ref_bf, atol=2e-2, rtol=2e-2), float(jnp.max(jnp.abs(out - ref_bf)))
    assert jnp.allclose(out, ref_f32, atol=1e-1, rtol=1e-1), float(jnp.max(jnp.abs(out - ref_f32)))

    print("KERNEL_OK")
</pallas_src>

<mosaic_0001>
module attributes {stable_mosaic.version = 11 : i64} {
  func.func @_mlp_kernel(%arg0: i32, %arg1: memref<8x784xf32, #tpu.memory_space<vmem>>, %arg2: memref<784x64xbf16, #tpu.memory_space<vmem>>, %arg3: memref<1x64xf32, #tpu.memory_space<vmem>>, %arg4: memref<64x128xbf16, #tpu.memory_space<vmem>>, %arg5: memref<1x128xf32, #tpu.memory_space<vmem>>, %arg6: memref<8x128xbf16, #tpu.memory_space<vmem>>) attributes {dimension_semantics = [#tpu.dimension_semantics<parallel>], iteration_bounds = array<i64: 1>, scalar_prefetch = 0 : i64, scratch_operands = 0 : i64, tpu.core_type = #tpu.core_type<tc>, window_params = [{transform_indices = @transform_0, window_bounds = array<i64: 8, 784>}, {pipeline_mode = #tpu.pipeline_mode<synchronous>, transform_indices = @transform_1, window_bounds = array<i64: 784, 64>}, {pipeline_mode = #tpu.pipeline_mode<synchronous>, transform_indices = @transform_2, window_bounds = array<i64: 1, 64>}, {pipeline_mode = #tpu.pipeline_mode<synchronous>, transform_indices = @transform_3, window_bounds = array<i64: 64, 128>}, {pipeline_mode = #tpu.pipeline_mode<synchronous>, transform_indices = @transform_4, window_bounds = array<i64: 1, 128>}, {transform_indices = @transform_5, window_bounds = array<i64: 8, 128>}]} {
    %c0 = arith.constant 0 : index
    %c0_0 = arith.constant 0 : index
    %0 = vector.load %arg1[%c0, %c0_0] : memref<8x784xf32, #tpu.memory_space<vmem>>, vector<8x784xf32>
    %1 = arith.truncf %0 : vector<8x784xf32> to vector<8x784xbf16>
    %c0_1 = arith.constant 0 : index
    %c0_2 = arith.constant 0 : index
    %2 = vector.load %arg2[%c0_1, %c0_2] : memref<784x64xbf16, #tpu.memory_space<vmem>>, vector<784x64xbf16>
    %cst = arith.constant dense<0.000000e+00> : vector<8x64xf32>
    %3 = tpu.matmul %1, %2, %cst {dimension_numbers = #tpu.dot_dimension_numbers<[1], [0], [0], [1], [0, 0, 1, 1], [], []>} : vector<8x784xbf16>, vector<784x64xbf16>, vector<8x64xf32> -> vector<8x64xf32>
    %c0_3 = arith.constant 0 : index
    %c0_4 = arith.constant 0 : index
    %4 = vector.load %arg3[%c0_3, %c0_4] : memref<1x64xf32, #tpu.memory_space<vmem>>, vector<1x64xf32>
    %5 = vector.broadcast %4 : vector<1x64xf32> to vector<8x64xf32>
    %6 = arith.addf %3, %5 : vector<8x64xf32>
    %7 = arith.mulf %6, %6 : vector<8x64xf32>
    %8 = arith.truncf %7 : vector<8x64xf32> to vector<8x64xbf16>
    %c0_5 = arith.constant 0 : index
    %c0_6 = arith.constant 0 : index
    %9 = vector.load %arg4[%c0_5, %c0_6] : memref<64x128xbf16, #tpu.memory_space<vmem>>, vector<64x128xbf16>
    %cst_7 = arith.constant dense<0.000000e+00> : vector<8x128xf32>
    %10 = tpu.matmul %8, %9, %cst_7 {dimension_numbers = #tpu.dot_dimension_numbers<[1], [0], [0], [1], [0, 0, 1, 1], [], []>} : vector<8x64xbf16>, vector<64x128xbf16>, vector<8x128xf32> -> vector<8x128xf32>
    %c0_8 = arith.constant 0 : index
    %c0_9 = arith.constant 0 : index
    %11 = vector.load %arg5[%c0_8, %c0_9] : memref<1x128xf32, #tpu.memory_space<vmem>>, vector<1x128xf32>
    %12 = vector.broadcast %11 : vector<1x128xf32> to vector<8x128xf32>
    %13 = arith.addf %10, %12 : vector<8x128xf32>
    %14 = arith.truncf %13 : vector<8x128xf32> to vector<8x128xbf16>
    %c0_10 = arith.constant 0 : index
    %c0_11 = arith.constant 0 : index
    %15 = vector.load %arg6[%c0_10, %c0_11] : memref<8x128xbf16, #tpu.memory_space<vmem>>, vector<8x128xbf16>
    tpu.vector_store %arg6[%c0_10, %c0_11], %14 {strides = array<i32>} : memref<8x128xbf16, #tpu.memory_space<vmem>>, vector<8x128xbf16>,
    return
  }
  func.func @transform_0(%arg0: i32) -> (i32, i32) {
    %c0_i32 = arith.constant 0 : i32
    %c0_i32_0 = arith.constant 0 : i32
    return %arg0, %c0_i32 : i32, i32
  }
  func.func @transform_1(%arg0: i32) -> (i32, i32) {
    %c0_i32 = arith.constant 0 : i32
    %c0_i32_0 = arith.constant 0 : i32
    %c0_i32_1 = arith.constant 0 : i32
    return %c0_i32, %c0_i32_0 : i32, i32
  }
  func.func @transform_2(%arg0: i32) -> (i32, i32) {
    %c0_i32 = arith.constant 0 : i32
    %c0_i32_0 = arith.constant 0 : i32
    %c0_i32_1 = arith.constant 0 : i32
    return %c0_i32, %c0_i32_0 : i32, i32
  }
  func.func @transform_3(%arg0: i32) -> (i32, i32) {
    %c0_i32 = arith.constant 0 : i32
    %c0_i32_0 = arith.constant 0 : i32
    %c0_i32_1 = arith.constant 0 : i32
    return %c0_i32, %c0_i32_0 : i32, i32
  }
  func.func @transform_4(%arg0: i32) -> (i32, i32) {
    %c0_i32 = arith.constant 0 : i32
    %c0_i32_0 = arith.constant 0 : i32
    %c0_i32_1 = arith.constant 0 : i32
    return %c0_i32, %c0_i32_0 : i32, i32
  }
  func.func @transform_5(%arg0: i32) -> (i32, i32) {
    %c0_i32 = arith.constant 0 : i32
    %c0_i32_0 = arith.constant 0 : i32
    return %arg0, %c0_i32 : i32, i32
  }
}

</mosaic_0001>

<bundles_post_ra>
// kernel: neural_network_forward.1
= control target key start
LH: loop header
LB: loop body
LE: loop exit
PB: predicated region body
PF: predicated region fallthrough
CT: control target
= control target key end

     0   :  { %v892_v44 = vmov 0.0   ;;  %vm893_vm0 = vmmov 0   ;;  %vm434_vm1 = vcmask 130048   ;;  %vm639_vm2 = vcmask 523264   ;;  %s1115_s1 = inlined_call_operand.vmem [shape: bf16[784,64], index: 1, kind: input, shape index: {}]   ;;  %s1116_s0 = inlined_call_operand.vmem [shape: f32[8,784], index: 0, kind: input, shape index: {}]   ;;  %s1117_s3 = inlined_call_operand.vmem [shape: bf16[64,128], index: 3, kind: input, shape index: {}]   ;;  %s1118_s2 = inlined_call_operand.vmem [shape: f32[1,64], index: 2, kind: input, shape index: {}]   ;;  %s1119_s4 = inlined_call_operand.vmem [shape: f32[1,128], index: 4, kind: input, shape index: {}]   ;;  %s1120_s5 = inlined_call_operand.vmem [shape: bf16[8,128], index: 5, kind: output, shape index: {}]  }
   0x1   :  { %v839_v0 = vld [vmem:[%s1115_s1 + $0x40] sm:$0xff]   ;;  %v843_v4 = vld [vmem:[%s1115_s1 + $0x48] sm:$0xff]   ;;  %v847_v8 = vld [vmem:[%s1115_s1 + $0x50] sm:$0xff]  }
   0x2   :  { %v840_v1 = vld [vmem:[%s1115_s1] sm:$0xff]   ;;  %746 = vmatprep.subr.bf16.mxu0 %v839_v0  ;;  %v844_v5 = vld [vmem:[%s1115_s1 + $0x8] sm:$0xff]   ;;  %v848_v9 = vld [vmem:[%s1115_s1 + $0x10] sm:$0xff]  }
   0x3   :  { %v841_v2 = vld [vmem:[%s1115_s1 + $0xc0] sm:$0xff]   ;;  %747 = vmatpush3.bf16.msra.mxu0 %v840_v1  ;;  %v845_v6 = vld [vmem:[%s1115_s1 + $0xc8] sm:$0xff]   ;;  %v849_v10 = vld [vmem:[%s1115_s1 + $0xd0] sm:$0xff]  }
   0x4   :  { %v842_v3 = vld [vmem:[%s1115_s1 + $0x80] sm:$0xff]   ;;  %768 = vmatprep.subr.bf16.mxu1 %v841_v2  ;;  %748 = vmatprep.subr.bf16.mxu0 %v843_v4  ;;  %v846_v7 = vld [vmem:[%s1115_s1 + $0x88] sm:$0xff]   ;;  %v850_v11 = vld [vmem:[%s1115_s1 + $0x90] sm:$0xff]  }
   0x5   :  { %769 = vmatpush3.bf16.msra.mxu1 %v842_v3  ;;  %v851_v12 = vld [vmem:[%s1115_s1 + $0x58] sm:$0xff]   ;;  %v855_v16 = vld [vmem:[%s1115_s1 + $0x60] sm:$0xff]   ;;  %v859_v20 = vld [vmem:[%s1115_s1 + $0x68] sm:$0xff]  }
   0x6   :  { %770 = vmatprep.subr.bf16.mxu1 %v845_v6  ;;  %v852_v13 = vld [vmem:[%s1115_s1 + $0x18] sm:$0xff]   ;;  %v856_v17 = vld [vmem:[%s1115_s1 + $0x20] sm:$0xff]   ;;  %v860_v21 = vld [vmem:[%s1115_s1 + $0x28] sm:$0xff]  }
   0x7   :  { %749 = vmatpush3.bf16.msra.mxu0 %v844_v5  ;;  %v853_v14 = vld [vmem:[%s1115_s1 + $0xd8] sm:$0xff]   ;;  %v857_v18 = vld [vmem:[%s1115_s1 + $0xe0] sm:$0xff]   ;;  %v861_v22 = vld [vmem:[%s1115_s1 + $0xe8] sm:$0xff]  }
   0x8   :  { %750 = vmatprep.subr.bf16.mxu0 %v847_v8  ;;  %v854_v15 = vld [vmem:[%s1115_s1 + $0x98] sm:$0xff]   ;;  %v858_v19 = vld [vmem:[%s1115_s1 + $0xa0] sm:$0xff]   ;;  %v862_v23 = vld [vmem:[%s1115_s1 + $0xa8] sm:$0xff]  }
   0x9   :  { %771 = vmatpush3.bf16.msra.mxu1 %v846_v7  ;;  %v863_v24 = vld [vmem:[%s1115_s1 + $0x70] sm:$0xff]   ;;  %v867_v28 = vld [vmem:[%s1115_s1 + $0x78] sm:$0xff]   ;;  %v22_v31 = vld [vmem:[%s1116_s0 + $0x8] sm:$0xff] }
   0xa   :  { %772 = vmatprep.subr.bf16.mxu1 %v849_v10  ;;  %v864_v25 = vld [vmem:[%s1115_s1 + $0x30] sm:$0xff]   ;;  %v868_v29 = vld [vmem:[%s1115_s1 + $0x38] sm:$0xff]   ;;  %v29_v32 = vpack.c.bf16 %v22_v31, %v22_v31  ;;  %v21_v34 = vld [vmem:[%s1116_s0] sm:$0xff] }
   0xb   :  { %751 = vmatpush3.bf16.msra.mxu0 %v848_v9  ;;  %v865_v26 = vld [vmem:[%s1115_s1 + $0xf0] sm:$0xff]   ;;  %v869_v30 = vld [vmem:[%s1115_s1 + $0xf8] sm:$0xff]   ;;  %v28_v35 = vpack.c.bf16 %v21_v34, %v21_v34  ;;  %v871_v36 = vld [vmem:[%s1115_s1 + $0x140] sm:$0xff]  }
   0xc   :  { %752 = vmatprep.subr.bf16.mxu0 %v851_v12  ;;  %v866_v27 = vld [vmem:[%s1115_s1 + $0xb0] sm:$0xff]   ;;  %v870_v33 = vld [vmem:[%s1115_s1 + $0xb8] sm:$0xff]   ;;  %470 = vmatprep.mubr.bf16.mxu0 %v29_v32  ;;  %v872_v39 = vld [vmem:[%s1115_s1 + $0x100] sm:$0xff]  }
   0xd   :  { %773 = vmatpush3.bf16.msra.mxu1 %v850_v11  ;;  %v24_v37 = vld [vmem:[%s1116_s0 + $0x18] sm:$0xff]  ;;  %v23_v40 = vld [vmem:[%s1116_s0 + $0x10] sm:$0xff]  ;;  %v873_v42 = vld [vmem:[%s1115_s1 + $0x148] sm:$0xff]  }
   0xe   :  { %774 = vmatprep.subr.bf16.mxu1 %v853_v14  ;;  %v31_v38 = vpack.c.bf16 %v24_v37, %v24_v37  ;;  %v30_v41 = vpack.c.bf16 %v23_v40, %v23_v40  ;;  %v874_v43 = vld [vmem:[%s1115_s1 + $0x108] sm:$0xff]   ;;  %v875_v45 = vld [vmem:[%s1115_s1 + $0x150] sm:$0xff]   ;;  %v877_v47 = vld [vmem:[%s1115_s1 + $0x158] sm:$0xff]  }
   0xf   :  { %753 = vmatpush3.bf16.msra.mxu0 %v852_v13  ;;  %v876_v46 = vld [vmem:[%s1115_s1 + $0x110] sm:$0xff]   ;;  %v878_v48 = vld [vmem:[%s1115_s1 + $0x118] sm:$0xff]   ;;  %v879_v49 = vld [vmem:[%s1115_s1 + $0x160] sm:$0xff]  }
  0x10   :  { %754 = vmatprep.subr.bf16.mxu0 %v855_v16  ;;  %510 = vmatprep.mubr.bf16.mxu1 %v31_v38  ;;  %v880_v50 = vld [vmem:[%s1115_s1 + $0x120] sm:$0xff]   ;;  %v881_v51 = vld [vmem:[%s1115_s1 + $0x168] sm:$0xff]   ;;  %v27_v55 = vld [vmem:[%s1116_s0 + $0x30] sm:$0xff] }
  0x11   :  { %775 = vmatpush3.bf16.msra.mxu1 %v854_v15  ;;  %v887_v52 = vld [vmem:[%s1115_s1 + $0x180] sm:$0xff]   ;;  %v26_v53 = vld [vmem:[%s1116_s0 + $0x28] sm:$0xff]  ;;  %v34_v57 = vpack.c.bf16 %v27_v55, %v27_v55  ;;  %v883_v58 = vld [vmem:[%s1115_s1 + $0x170] sm:$0xff]  }
  0x12   :  { %776 = vmatprep.subr.bf16.mxu1 %v857_v18  ;;  %v33_v54 = vpack.c.bf16 %v26_v53, %v26_v53  ;;  %v882_v56 = vld [vmem:[%s1115_s1 + $0x128] sm:$0xff]   ;;  %v884_v59 = vld [vmem:[%s1115_s1 + $0x130] sm:$0xff]   ;;  %v885_v60 = vld [vmem:[%s1115_s1 + $0x178] sm:$0xff]  }
  0x13   :  { %755 = vmatpush3.bf16.msra.mxu0 %v856_v17  ;;  %v886_v61 = vld [vmem:[%s1115_s1 + $0x138] sm:$0xff]   ;;  %v25_v62 = vld [vmem:[%s1116_s0 + $0x20] sm:$0xff]  ;;  %v889_v1 = vld [vmem:[%s1117_s3 + $0x8] sm:$0xff]  }
  0x14   :  { %756 = vmatprep.subr.bf16.mxu0 %v859_v20  ;;  %v32_v63 = vpack.c.bf16 %v25_v62, %v25_v62  ;;  %v888_v0 = vld [vmem:[%s1117_s3] sm:$0xff]   ;;  %v890_v2 = vld [vmem:[%s1117_s3 + $0x10] sm:$0xff]   ;;  %v891_v3 = vld [vmem:[%s1117_s3 + $0x18] sm:$0xff]  }
  0x15   :  { %777 = vmatpush3.bf16.msra.mxu1 %v858_v19  ;;  %v689_v5 = vld [vmem:[%s1118_s2] ss:$0 sm:$0xff] }
  0x16   :  { %778 = vmatprep.subr.bf16.mxu1 %v861_v22 }
  0x17   :  { %757 = vmatpush3.bf16.msra.mxu0 %v860_v21 }
  0x18   :  { %758 = vmatprep.subr.bf16.mxu0 %v863_v24 }
  0x19   :  { %779 = vmatpush3.bf16.msra.mxu1 %v862_v23 }
  0x1a   :  { %780 = vmatprep.subr.bf16.mxu1 %v865_v26 }
  0x1b   :  { %759 = vmatpush3.bf16.msra.mxu0 %v864_v25 }
  0x1c   :  { %760 = vmatprep.subr.bf16.mxu0 %v867_v28 }
  0x1d   :  { %781 = vmatpush3.bf16.msra.mxu1 %v866_v27 }
  0x1e   :  { %782 = vmatprep.subr.bf16.mxu1 %v869_v30  ;;  %v740_v30 = vld [vmem:[%s1119_s4] ss:$0 sm:$0xff] }
  0x1f   :  { %761 = vmatpush3.bf16.msra.mxu0 %v868_v29 }
  0x20   :  { %790 = vmatprep.subr.bf16.mxu0 %v871_v36 }
  0x21   :  { %783 = vmatpush3.bf16.msra.mxu1 %v870_v33 }
  0x22   :  { %471 = vmatmul.mubr.bf16.vlgmr.msra.gmra.mrb[0].mxu0 %v28_v35  ;;  %819 = vmatprep.subr.bf16.mxu1 %v892_v44 }
  0x23   :  { %791 = vmatpush3.bf16.msra.mxu0 %v872_v39  ;;  %550 = vmatprep.mubr.bf16.mxu0 %v33_v54 }
  0x24   :  { %511 = vmatmul.mubr.bf16.vlgmr.msra.gmra.mrb[0].mxu1 %v30_v41  ;;  %792 = vmatprep.subr.bf16.mxu0 %v873_v42 }
  0x25   :  { %821 = vmatprep.mubr.msk.bf16.mxu1 %vm893_vm0, %v892_v44  ;;  %820 = vmatpush3.bf16.msra.mxu1 %v887_v52 }
  0x26   :  { %825 = vmatprep.subr.bf16.mxu1 %v892_v44 }
  0x27   :  { %793 = vmatpush3.bf16.msra.mxu0 %v874_v43 }
  0x28   :  { %794 = vmatprep.subr.bf16.mxu0 %v875_v45 }
  0x2b   :  { %795 = vmatpush3.bf16.msra.mxu0 %v876_v46 }
  0x2c   :  { %796 = vmatprep.subr.bf16.mxu0 %v877_v47  ;;  %822 = vmatmul.mubr.msk.bf16.vlgmr.msra.gmra.mrb[4].mxu1 %vm434_vm1, %v34_v57 }
  0x2d   :  { %833 = vmatprep.mubr.msk.bf16.mxu1 %vm893_vm0, %v892_v44  ;;  %826 = vmatpush3.bf16.msra.mxu1 %v888_v0 }
  0x2e   :  { %827 = vmatprep.subr.bf16.mxu1 %v892_v44 }
  0x2f   :  { %797 = vmatpush3.bf16.msra.mxu0 %v878_v48 }
  0x30   :  { %798 = vmatprep.subr.bf16.mxu0 %v879_v49 }
  0x31   :  { %828 = vmatpush3.bf16.msra.mxu1 %v889_v1 }
  0x32   :  { %829 = vmatprep.subr.bf16.mxu1 %v892_v44 }
  0x33   :  { %799 = vmatpush3.bf16.msra.mxu0 %v880_v50 }
  0x34   :  { %800 = vmatprep.subr.bf16.mxu0 %v881_v51 }
  0x35   :  { %830 = vmatpush3.bf16.msra.mxu1 %v890_v2 }
  0x36   :  { %831 = vmatprep.subr.bf16.mxu1 %v892_v44 }
  0x37   :  { %801 = vmatpush3.bf16.msra.mxu0 %v882_v56 }
  0x38   :  { %802 = vmatprep.subr.bf16.mxu0 %v883_v58 }
  0x39   :  { %832 = vmatpush3.bf16.msra.mxu1 %v891_v3 }
  0x3b   :  { %803 = vmatpush3.bf16.msra.mxu0 %v884_v59 }
  0x3c   :  { %804 = vmatprep.subr.bf16.mxu0 %v885_v60 }
  0x3f   :  { %805 = vmatpush3.bf16.msra.mxu0 %v886_v61 }
  0x42   :  { %551 = vmatmul.mubr.bf16.vlgmr.msra.gmra.mrb[4].mxu0 %v32_v63 }
  0xf5   :  { %v762_v4 = vpop.f32.mrb[0].mxu0 }
  0xf6   :  { %v763_v6 = vpop.f32.mrb[1].mxu0 }
  0xf7   :  { %v764_v7 = vadd.f32 %v763_v6, %v762_v4  ;;  %v765_v8 = vpop.f32.mrb[2].mxu0  ;;  %v784_v9 = vpop.f32.mrb[0].mxu1 }
  0xf8   :  { %v766_v10 = vpop.f32.mrb[3].mxu0  ;;  %v785_v12 = vpop.f32.mrb[1].mxu1 }
  0xf9   :  { %v473_v11 = vadd.f32 %v764_v7, %v689_v5  ;;  %v786_v13 = vadd.f32 %v785_v12, %v784_v9  ;;  %v787_v14 = vpop.f32.mrb[2].mxu1 }
  0xfa   :  { %v788_v15 = vpop.f32.mrb[3].mxu1 }
  0xfb   :  { %v513_v16 = vadd.f32 %v786_v13, %v473_v11 }
  0xff   :  { %v592_v17 = vpop.f32.mrb[4].mxu1 }
 0x100   :  { %v823_v18 = vpop.f32.mrb[5].mxu1 }
 0x101   :  { %v595_v19 = vpop.f32.mrb[6].mxu1 }
 0x102   :  { %v824_v20 = vpop.f32.mrb[7].mxu1 }
 0x115   :  { %v806_v21 = vpop.f32.mrb[4].mxu0 }
 0x116   :  { %v807_v22 = vpop.f32.mrb[5].mxu0 }
 0x117   :  { %v808_v23 = vadd.f32 %v807_v22, %v806_v21  ;;  %v809_v24 = vpop.f32.mrb[6].mxu0 }
 0x118   :  { %v810_v25 = vpop.f32.mrb[7].mxu0 }
 0x119   :  { %v553_v26 = vadd.f32 %v808_v23, %v513_v16 }
 0x11b   :  { %v593_v27 = vadd.f32 %v592_v17, %v553_v26 }
 0x11d   :  { %v598_v28 = vmul.f32 %v593_v27, %v593_v27 }
 0x11f   :  { %v599_v29 = vpack.c.bf16 %v598_v28, %v598_v28 }
 0x121   :  { %834 = vmatmul.mubr.msk.bf16.vlgmr.msra.gmra.mrb[8].mxu1 %vm639_vm2, %v599_v29 }
 0x1f4   :  { %v677_v31 = vpop.f32.mrb[8].mxu1 }
 0x1f5   :  { %v678_v32 = vadd.f32 %v740_v30, %v677_v31  ;;  %v835_v33 = vpop.f32.mrb[9].mxu1 }
 0x1f6   :  { %v680_v34 = vpop.f32.mrb[10].mxu1 }
 0x1f7   :  { %v683_v35 = vpack.c.bf16 %v678_v32, %v678_v32  ;;  %v836_v36 = vpop.f32.mrb[11].mxu1 }
 0x1f9   :  { %684 = vst [vmem:[%s1120_s5] sm:$0xf] %v683_v35 }

</bundles_post_ra>
